<compile_context>
chip_gen: v6e
topology: v6e:2x2x1
jax: 0.10.0
libtpu: 0.0.40
codegen_flags: <defaults>
</compile_context>

<pallas_src>
import jax
import jax.numpy as jnp
from jax.experimental import pallas as pl
from jax.experimental.pallas import tpu as pltpu


def _round_up(v, m):
    return (v + m - 1) // m * m


def _ffn_kernel(x_ref, w1_ref, b1_ref, w2_ref, b2_ref, o_ref):
    # x tile arrives f32; cast to bf16 for the MXU (cast is VPU work hidden
    # under the matmul). Accumulate in f32, do bias+ReLU epilogue in f32.
    x = x_ref[...].astype(jnp.bfloat16)                    # (tm, d_in) bf16
    h = jnp.dot(x, w1_ref[...], preferred_element_type=jnp.float32)
    h = jnp.maximum(h + b1_ref[...], 0.0)                  # relu(x @ W1 + b1), f32
    y = jnp.dot(h.astype(jnp.bfloat16), w2_ref[...],
                preferred_element_type=jnp.float32)
    y = jnp.maximum(y + b2_ref[...], 0.0)                  # relu(h @ W2 + b2), f32
    o_ref[...] = y.astype(o_ref.dtype)


def positionwise_feed_forward(x, w1, b1, w2, b2, *, row_tile=512):
    """x: (B, S, d_in); w1: (d_in, d_ff); b1: (d_ff,); w2: (d_ff, d_out); b2: (d_out,)."""
    B, S, d_in = x.shape
    d_ff = w1.shape[1]
    d_out = w2.shape[1]
    N = B * S

    x2 = x.reshape(N, d_in)                   # contiguous reshape: no HBM pass
    w1b = w1.astype(jnp.bfloat16)             # tiny one-time casts; halves the
    w2b = w2.astype(jnp.bfloat16)             # resident weight VMEM + DMA bytes
    b1r = b1.reshape(1, d_ff).astype(jnp.float32)
    b2r = b2.reshape(1, d_out).astype(jnp.float32)

    # ---- VMEM budget & row-tile selection ----------------------------------
    try:
        vmem_cap = int(getattr(pltpu.get_tpu_info(), "vmem_capacity_bytes",
                               64 * 1024 * 1024))
    except Exception:
        vmem_cap = 64 * 1024 * 1024           # v7x per-TensorCore lower bound
    budget = (3 * vmem_cap) // 4              # leave headroom for the compiler

    # Resident operands (conservatively assume double buffering in case the
    # single-buffer request is rejected): bf16 weights + f32 biases.
    resident = 2 * (2 * (d_in * d_ff + d_ff * d_out) + 4 * (d_ff + d_out))

    def tile_vmem(t):
        io = 2 * t * (d_in + d_out) * 4                   # dbl-buffered x/out tiles (f32)
        scratch = t * (2 * d_in + 6 * d_ff + 4 * d_out)   # bf16 copies + f32 hidden
        return io + scratch

    tm = max(8, _round_up(min(row_tile, _round_up(N, 8)), 8))
    while tm > 8 and resident + tile_vmem(tm) > budget:
        tm = max(8, _round_up(tm // 2, 8))
    grid = pl.cdiv(N, tm)                     # ragged last block is masked by Pallas

    vmem_limit = int(min(budget,
                         max(2 * (resident + tile_vmem(tm)), 16 * 1024 * 1024)))

    flops = 2 * N * d_in * d_ff + 2 * N * d_ff * d_out
    bytes_accessed = (4 * N * (d_in + d_out)              # x in + y out (f32)
                      + 2 * (d_in * d_ff + d_ff * d_out)  # bf16 weights
                      + 4 * (d_ff + d_out))               # f32 biases

    # NOTE: production feature dims (d_ff, d_out) should be multiples of 128
    # lanes for unmasked stores / full MXU utilization; blocks below use the
    # full array dims so odd toy sizes remain legal.
    def run(single_buffer_weights):
        wkw = ({"pipeline_mode": pl.Buffered(1)} if single_buffer_weights else {})
        in_specs = [
            pl.BlockSpec((tm, d_in), lambda i: (i, 0)),            # x tile (streamed)
            pl.BlockSpec((d_in, d_ff), lambda i: (0, 0), **wkw),   # W1 (resident)
            pl.BlockSpec((1, d_ff), lambda i: (0, 0), **wkw),      # b1 (resident)
            pl.BlockSpec((d_ff, d_out), lambda i: (0, 0), **wkw),  # W2 (resident)
            pl.BlockSpec((1, d_out), lambda i: (0, 0), **wkw),     # b2 (resident)
        ]
        return pl.pallas_call(
            _ffn_kernel,
            out_shape=jax.ShapeDtypeStruct((N, d_out), x.dtype),
            grid_spec=pltpu.PrefetchScalarGridSpec(
                num_scalar_prefetch=0,
                grid=(grid,),
                in_specs=in_specs,
                out_specs=pl.BlockSpec((tm, d_out), lambda i: (i, 0)),
            ),
            compiler_params=pltpu.CompilerParams(
                dimension_semantics=("parallel",),
                vmem_limit_bytes=vmem_limit,
            ),
            cost_estimate=pl.CostEstimate(
                flops=flops, transcendentals=0, bytes_accessed=bytes_accessed),
        )(x2, w1b, b1r, w2b, b2r)

    try:
        out = run(True)
    except Exception:
        # pl.Buffered(1) not supported on this JAX version -> default buffering.
        out = run(False)

    return out.reshape(B, S, d_out)


def _reference(x, w1, b1, w2, b2):
    """Plain-JAX replica of the PyTorch forward (dropout p=0 is a no-op)."""
    h = jnp.maximum(jnp.dot(x, w1) + b1, 0.0)
    y = jnp.maximum(jnp.dot(h, w2) + b2, 0.0)
    return y


if __name__ == "__main__":
    # Small deterministic config: batch=2, seq=8, input_depth=32,
    # filter_size=64, output_depth=32 (layer_config='ll', dropout=0.0).
    B, S = 2, 8
    D_IN, D_FF, D_OUT = 32, 64, 32

    key = jax.random.PRNGKey(0)
    kx, k1, k2, k3, k4 = jax.random.split(key, 5)
    x = jax.random.normal(kx, (B, S, D_IN), dtype=jnp.float32)

    # nn.Linear-style uniform(-1/sqrt(fan_in), 1/sqrt(fan_in)) init, deterministic.
    lim1 = 1.0 / (D_IN ** 0.5)
    lim2 = 1.0 / (D_FF ** 0.5)
    w1 = jax.random.uniform(k1, (D_IN, D_FF), jnp.float32, -lim1, lim1)
    b1 = jax.random.uniform(k2, (D_FF,), jnp.float32, -lim1, lim1)
    w2 = jax.random.uniform(k3, (D_FF, D_OUT), jnp.float32, -lim2, lim2)
    b2 = jax.random.uniform(k4, (D_OUT,), jnp.float32, -lim2, lim2)

    out = positionwise_feed_forward(x, w1, b1, w2, b2)
    out = jax.block_until_ready(out)

    ref = _reference(x, w1, b1, w2, b2)
    assert out.shape == (B, S, D_OUT), out.shape
    # bf16 MXU operands with f32 accumulation -> relaxed tolerance vs f32 ref.
    assert jnp.allclose(out, ref, rtol=2e-2, atol=2e-2), (out, ref)

    print("KERNEL_OK")
</pallas_src>

<mosaic_0001>
module attributes {stable_mosaic.version = 11 : i64} {
  func.func @_ffn_kernel(%arg0: i32, %arg1: memref<16x32xf32, #tpu.memory_space<vmem>>, %arg2: memref<32x64xbf16, #tpu.memory_space<vmem>>, %arg3: memref<1x64xf32, #tpu.memory_space<vmem>>, %arg4: memref<64x32xbf16, #tpu.memory_space<vmem>>, %arg5: memref<1x32xf32, #tpu.memory_space<vmem>>, %arg6: memref<16x32xf32, #tpu.memory_space<vmem>>) attributes {dimension_semantics = [#tpu.dimension_semantics<parallel>], iteration_bounds = array<i64: 1>, scalar_prefetch = 0 : i64, scratch_operands = 0 : i64, tpu.core_type = #tpu.core_type<tc>, window_params = [{transform_indices = @transform_0, window_bounds = array<i64: 16, 32>}, {pipeline_mode = #tpu.pipeline_mode<synchronous>, transform_indices = @transform_1, window_bounds = array<i64: 32, 64>}, {pipeline_mode = #tpu.pipeline_mode<synchronous>, transform_indices = @transform_2, window_bounds = array<i64: 1, 64>}, {pipeline_mode = #tpu.pipeline_mode<synchronous>, transform_indices = @transform_3, window_bounds = array<i64: 64, 32>}, {pipeline_mode = #tpu.pipeline_mode<synchronous>, transform_indices = @transform_4, window_bounds = array<i64: 1, 32>}, {transform_indices = @transform_5, window_bounds = array<i64: 16, 32>}]} {
    %c0 = arith.constant 0 : index
    %c0_0 = arith.constant 0 : index
    %0 = vector.load %arg1[%c0, %c0_0] : memref<16x32xf32, #tpu.memory_space<vmem>>, vector<16x32xf32>
    %1 = arith.truncf %0 : vector<16x32xf32> to vector<16x32xbf16>
    %c0_1 = arith.constant 0 : index
    %c0_2 = arith.constant 0 : index
    %2 = vector.load %arg2[%c0_1, %c0_2] : memref<32x64xbf16, #tpu.memory_space<vmem>>, vector<32x64xbf16>
    %cst = arith.constant dense<0.000000e+00> : vector<16x64xf32>
    %3 = tpu.matmul %1, %2, %cst {dimension_numbers = #tpu.dot_dimension_numbers<[1], [0], [0], [1], [0, 0, 1, 1], [], []>} : vector<16x32xbf16>, vector<32x64xbf16>, vector<16x64xf32> -> vector<16x64xf32>
    %c0_3 = arith.constant 0 : index
    %c0_4 = arith.constant 0 : index
    %4 = vector.load %arg3[%c0_3, %c0_4] : memref<1x64xf32, #tpu.memory_space<vmem>>, vector<1x64xf32>
    %5 = vector.broadcast %4 : vector<1x64xf32> to vector<16x64xf32>
    %6 = arith.addf %3, %5 : vector<16x64xf32>
    %cst_5 = arith.constant 0.000000e+00 : f32
    %7 = vector.broadcast %cst_5 : f32 to vector<16x64xf32>
    %8 = arith.maximumf %6, %7 : vector<16x64xf32>
    %9 = arith.truncf %8 : vector<16x64xf32> to vector<16x64xbf16>
    %c0_6 = arith.constant 0 : index
    %c0_7 = arith.constant 0 : index
    %10 = vector.load %arg4[%c0_6, %c0_7] : memref<64x32xbf16, #tpu.memory_space<vmem>>, vector<64x32xbf16>
    %cst_8 = arith.constant dense<0.000000e+00> : vector<16x32xf32>
    %11 = tpu.matmul %9, %10, %cst_8 {dimension_numbers = #tpu.dot_dimension_numbers<[1], [0], [0], [1], [0, 0, 1, 1], [], []>} : vector<16x64xbf16>, vector<64x32xbf16>, vector<16x32xf32> -> vector<16x32xf32>
    %c0_9 = arith.constant 0 : index
    %c0_10 = arith.constant 0 : index
    %12 = vector.load %arg5[%c0_9, %c0_10] : memref<1x32xf32, #tpu.memory_space<vmem>>, vector<1x32xf32>
    %13 = vector.broadcast %12 : vector<1x32xf32> to vector<16x32xf32>
    %14 = arith.addf %11, %13 : vector<16x32xf32>
    %cst_11 = arith.constant 0.000000e+00 : f32
    %15 = vector.broadcast %cst_11 : f32 to vector<16x32xf32>
    %16 = arith.maximumf %14, %15 : vector<16x32xf32>
    %c0_12 = arith.constant 0 : index
    %c0_13 = arith.constant 0 : index
    %17 = vector.load %arg6[%c0_12, %c0_13] : memref<16x32xf32, #tpu.memory_space<vmem>>, vector<16x32xf32>
    tpu.vector_store %arg6[%c0_12, %c0_13], %16 {strides = array<i32>} : memref<16x32xf32, #tpu.memory_space<vmem>>, vector<16x32xf32>,
    return
  }
  func.func @transform_0(%arg0: i32) -> (i32, i32) {
    %c0_i32 = arith.constant 0 : i32
    %c0_i32_0 = arith.constant 0 : i32
    return %arg0, %c0_i32 : i32, i32
  }
  func.func @transform_1(%arg0: i32) -> (i32, i32) {
    %c0_i32 = arith.constant 0 : i32
    %c0_i32_0 = arith.constant 0 : i32
    %c0_i32_1 = arith.constant 0 : i32
    return %c0_i32, %c0_i32_0 : i32, i32
  }
  func.func @transform_2(%arg0: i32) -> (i32, i32) {
    %c0_i32 = arith.constant 0 : i32
    %c0_i32_0 = arith.constant 0 : i32
    %c0_i32_1 = arith.constant 0 : i32
    return %c0_i32, %c0_i32_0 : i32, i32
  }
  func.func @transform_3(%arg0: i32) -> (i32, i32) {
    %c0_i32 = arith.constant 0 : i32
    %c0_i32_0 = arith.constant 0 : i32
    %c0_i32_1 = arith.constant 0 : i32
    return %c0_i32, %c0_i32_0 : i32, i32
  }
  func.func @transform_4(%arg0: i32) -> (i32, i32) {
    %c0_i32 = arith.constant 0 : i32
    %c0_i32_0 = arith.constant 0 : i32
    %c0_i32_1 = arith.constant 0 : i32
    return %c0_i32, %c0_i32_0 : i32, i32
  }
  func.func @transform_5(%arg0: i32) -> (i32, i32) {
    %c0_i32 = arith.constant 0 : i32
    %c0_i32_0 = arith.constant 0 : i32
    return %arg0, %c0_i32 : i32, i32
  }
}

module attributes {stable_mosaic.version = 11 : i64} {
  func.func @_ffn_kernel(%arg0: i32, %arg1: memref<16x32xf32, #tpu.memory_space<vmem>>, %arg2: memref<32x64xbf16, #tpu.memory_space<vmem>>, %arg3: memref<1x64xf32, #tpu.memory_space<vmem>>, %arg4: memref<64x32xbf16, #tpu.memory_space<vmem>>, %arg5: memref<1x32xf32, #tpu.memory_space<vmem>>, %arg6: memref<16x32xf32, #tpu.memory_space<vmem>>) attributes {dimension_semantics = [#tpu.dimension_semantics<parallel>], iteration_bounds = array<i64: 1>, scalar_prefetch = 0 : i64, scratch_operands = 0 : i64, tpu.core_type = #tpu.core_type<tc>, window_params = [{transform_indices = @transform_0, window_bounds = array<i64: 16, 32>}, {pipeline_mode = #tpu.pipeline_mode<synchronous>, transform_indices = @transform_1, window_bounds = array<i64: 32, 64>}, {pipeline_mode = #tpu.pipeline_mode<synchronous>, transform_indices = @transform_2, window_bounds = array<i64: 1, 64>}, {pipeline_mode = #tpu.pipeline_mode<synchronous>, transform_indices = @transform_3, window_bounds = array<i64: 64, 32>}, {pipeline_mode = #tpu.pipeline_mode<synchronous>, transform_indices = @transform_4, window_bounds = array<i64: 1, 32>}, {transform_indices = @transform_5, window_bounds = array<i64: 16, 32>}]} {
    %c0 = arith.constant 0 : index
    %c0_0 = arith.constant 0 : index
    %0 = vector.load %arg1[%c0, %c0_0] : memref<16x32xf32, #tpu.memory_space<vmem>>, vector<16x32xf32>
    %1 = arith.truncf %0 : vector<16x32xf32> to vector<16x32xbf16>
    %c0_1 = arith.constant 0 : index
    %c0_2 = arith.constant 0 : index
    %2 = vector.load %arg2[%c0_1, %c0_2] : memref<32x64xbf16, #tpu.memory_space<vmem>>, vector<32x64xbf16>
    %cst = arith.constant dense<0.000000e+00> : vector<16x64xf32>
    %3 = tpu.matmul %1, %2, %cst {dimension_numbers = #tpu.dot_dimension_numbers<[1], [0], [0], [1], [0, 0, 1, 1], [], []>} : vector<16x32xbf16>, vector<32x64xbf16>, vector<16x64xf32> -> vector<16x64xf32>
    %c0_3 = arith.constant 0 : index
    %c0_4 = arith.constant 0 : index
    %4 = vector.load %arg3[%c0_3, %c0_4] : memref<1x64xf32, #tpu.memory_space<vmem>>, vector<1x64xf32>
    %5 = vector.broadcast %4 : vector<1x64xf32> to vector<16x64xf32>
    %6 = arith.addf %3, %5 : vector<16x64xf32>
    %cst_5 = arith.constant 0.000000e+00 : f32
    %7 = vector.broadcast %cst_5 : f32 to vector<16x64xf32>
    %8 = arith.maximumf %6, %7 : vector<16x64xf32>
    %9 = arith.truncf %8 : vector<16x64xf32> to vector<16x64xbf16>
    %c0_6 = arith.constant 0 : index
    %c0_7 = arith.constant 0 : index
    %10 = vector.load %arg4[%c0_6, %c0_7] : memref<64x32xbf16, #tpu.memory_space<vmem>>, vector<64x32xbf16>
    %cst_8 = arith.constant dense<0.000000e+00> : vector<16x32xf32>
    %11 = tpu.matmul %9, %10, %cst_8 {dimension_numbers = #tpu.dot_dimension_numbers<[1], [0], [0], [1], [0, 0, 1, 1], [], []>} : vector<16x64xbf16>, vector<64x32xbf16>, vector<16x32xf32> -> vector<16x32xf32>
    %c0_9 = arith.constant 0 : index
    %c0_10 = arith.constant 0 : index
    %12 = vector.load %arg5[%c0_9, %c0_10] : memref<1x32xf32, #tpu.memory_space<vmem>>, vector<1x32xf32>
    %13 = vector.broadcast %12 : vector<1x32xf32> to vector<16x32xf32>
    %14 = arith.addf %11, %13 : vector<16x32xf32>
    %cst_11 = arith.constant 0.000000e+00 : f32
    %15 = vector.broadcast %cst_11 : f32 to vector<16x32xf32>
    %16 = arith.maximumf %14, %15 : vector<16x32xf32>
    %c0_12 = arith.constant 0 : index
    %c0_13 = arith.constant 0 : index
    %17 = vector.load %arg6[%c0_12, %c0_13] : memref<16x32xf32, #tpu.memory_space<vmem>>, vector<16x32xf32>
    tpu.vector_store %arg6[%c0_12, %c0_13], %16 {strides = array<i32>} : memref<16x32xf32, #tpu.memory_space<vmem>>, vector<16x32xf32>,
    return
  }
  func.func @transform_0(%arg0: i32) -> (i32, i32) {
    %c0_i32 = arith.constant 0 : i32
    %c0_i32_0 = arith.constant 0 : i32
    return %arg0, %c0_i32 : i32, i32
  }
  func.func @transform_1(%arg0: i32) -> (i32, i32) {
    %c0_i32 = arith.constant 0 : i32
    %c0_i32_0 = arith.constant 0 : i32
    %c0_i32_1 = arith.constant 0 : i32
    return %c0_i32, %c0_i32_0 : i32, i32
  }
  func.func @transform_2(%arg0: i32) -> (i32, i32) {
    %c0_i32 = arith.constant 0 : i32
    %c0_i32_0 = arith.constant 0 : i32
    %c0_i32_1 = arith.constant 0 : i32
    return %c0_i32, %c0_i32_0 : i32, i32
  }
  func.func @transform_3(%arg0: i32) -> (i32, i32) {
    %c0_i32 = arith.constant 0 : i32
    %c0_i32_0 = arith.constant 0 : i32
    %c0_i32_1 = arith.constant 0 : i32
    return %c0_i32, %c0_i32_0 : i32, i32
  }
  func.func @transform_4(%arg0: i32) -> (i32, i32) {
    %c0_i32 = arith.constant 0 : i32
    %c0_i32_0 = arith.constant 0 : i32
    %c0_i32_1 = arith.constant 0 : i32
    return %c0_i32, %c0_i32_0 : i32, i32
  }
  func.func @transform_5(%arg0: i32) -> (i32, i32) {
    %c0_i32 = arith.constant 0 : i32
    %c0_i32_0 = arith.constant 0 : i32
    return %arg0, %c0_i32 : i32, i32
  }
}

</mosaic_0001>

<bundles_post_ra>
// kernel: tpu_custom_call.1
= control target key start
LH: loop header
LB: loop body
LE: loop exit
PB: predicated region body
PF: predicated region fallthrough
CT: control target
= control target key end

     0   :  { %v271_v1 = vmov 0.0   ;;  %vm272_vm0 = vmmov 0   ;;  %vm48_vm1 = vcmask 261120   ;;  %s342_s0 = inlined_call_operand.vmem [shape: f32[16,32], index: 0, kind: input, shape index: {}]   ;;  %s343_s1 = inlined_call_operand.vmem [shape: bf16[32,64], index: 1, kind: input, shape index: {}]   ;;  %s344_s2 = inlined_call_operand.vmem [shape: f32[1,64], index: 2, kind: input, shape index: {}]   ;;  %s345_s3 = inlined_call_operand.vmem [shape: bf16[64,32], index: 3, kind: input, shape index: {}]   ;;  %s346_s4 = inlined_call_operand.vmem [shape: f32[1,32], index: 4, kind: input, shape index: {}]   ;;  %s347_s5 = inlined_call_operand.hbm [shape: f32[16,32], index: 5, kind: output, shape index: {}]  }
   0x1   :  { %v243_v0 = vld [vmem:[%s343_s1 + $0x8] sm:$0xff]   ;;  %218 = vmatprep.subr.bf16.mxu0 %v271_v1  ;;  %v244_v2 = vld [vmem:[%s343_s1] sm:$0xff]   ;;  %226 = vmatprep.subr.bf16.mxu1 %v271_v1  ;;  %v245_v5 = vld [vmem:[%s345_s3 + $0x18] sm:$0xff]  }
   0x2   :  { %219 = vmatpush3.bf16.msra.mxu0 %v243_v0  ;;  %222 = vmatprep.mubr.msk.bf16.mxu0 %vm272_vm0, %v271_v1  ;;  %v22_v3 = vld [vmem:[%s342_s0] sm:$0xff]  ;;  %v23_v4 = vld [vmem:[%s342_s0 + $0x8] sm:$0xff] }
   0x3   :  { %220 = vmatprep.subr.bf16.mxu0 %v271_v1  ;;  %234 = vmatprep.mubr.msk.bf16.mxu1 %vm272_vm0, %v271_v1  ;;  %v24_v6 = vpack.c.bf16 %v23_v4, %v22_v3 }
   0x4   :  { %227 = vmatpush3.bf16.msra.mxu1 %v245_v5 }
   0x5   :  { %228 = vmatprep.subr.bf16.mxu1 %v271_v1 }
   0x6   :  { %221 = vmatpush3.bf16.msra.mxu0 %v244_v2 }
   0x7   :  { %10 = vsyncpa [#allocation3], 0  ;;  %v246_v7 = vld [vmem:[%s345_s3 + $0x10] sm:$0xff]   ;;  %v247_v8 = vld [vmem:[%s345_s3 + $0x8] sm:$0xff]   ;;  %vm135_vm2 = vcmask 523264  }
   0x8   :  { %229 = vmatpush3.bf16.msra.mxu1 %v246_v7  ;;  %v248_v9 = vld [vmem:[%s345_s3] sm:$0xff]  }
   0x9   :  { %223 = vmatmul.mubr.msk.bf16.vlgmr.msra.gmra.mxu0 %vm48_vm1, %v24_v6  ;;  %230 = vmatprep.subr.bf16.mxu1 %v271_v1  ;;  %v200_v10 = vld [vmem:[%s344_s2] ss:$0 sm:$0xff]  ;;  %s273_s2 = smov [#allocation2]  }
   0xa   :  { %v204_v20 = vld [vmem:[%s346_s4] ss:$0 sm:$0xff]  ;;  %s189_s3 = sshll.u32 %s273_s2, 4  ;;  %s190_s3 = int_to_ptr.vmem [resolvable:$true] %s189_s3 }
   0xb   :  { %s249_s11 = scalar_lea.vmem %s190_s3, 256  ;;  %p254_p1 = scmp.lt.s32.totalorder %s190_s3, %s190_s3 }
   0xc   :  { %231 = vmatpush3.bf16.msra.mxu1 %v247_v8  ;;  %p250_p0 = scmp.ne.s32.totalorder %s190_s3, %s249_s11  ;;  %p255_p2 = scmp.lt.s32.totalorder %s249_s11, %s249_s11 }
   0xd   :  { %232 = vmatprep.subr.bf16.mxu1 %v271_v1 }
   0xe   :  { %p256_p3 = por %p255_p2, %p254_p1 }
  0x10   :  { %233 = vmatpush3.bf16.msra.mxu1 %v248_v9  ;;  %p257_p4 = pnand %p256_p3, %p250_p0 }
  0xc9   :  { %v86_v11 = vpop.f32.mrf.mxu0 }
  0xca   :  { %v87_v13 = vadd.f32 %v200_v10, %v86_v11 }
  0xcb   :  { %v224_v12 = vpop.f32.mrf.mxu0 }
  0xcc   :  { %v93_v17 = vmax.f32 %v87_v13, 0.0 }
  0xcd   :  { %v89_v14 = vpop.f32.mrf.mxu0 }
  0xce   :  { %v90_v15 = vadd.f32 %v200_v10, %v89_v14 }
  0xcf   :  { %v225_v16 = vpop.f32.mrf.mxu0 }
  0xd0   :  { %v94_v18 = vmax.f32 %v90_v15, 0.0 }
  0xd2   :  { %v95_v19 = vpack.c.bf16 %v94_v18, %v93_v17 }
  0xd4   :  { %235 = vmatmul.mubr.msk.bf16.vlgmr.msra.gmra.mxu1 %vm135_vm2, %v95_v19 }
 0x194   :  { %v173_v21 = vpop.f32.mrf.mxu1 }
 0x195   :  { %v174_v22 = vadd.f32 %v204_v20, %v173_v21 }
 0x196   :  { %v236_v23 = vpop.f32.mrf.mxu1 }
 0x197   :  { %v180_v24 = vmax.f32 %v174_v22, 0.0 }
 0x198   :  { %v176_v25 = vpop.f32.mrf.mxu1 }
 0x199   :  { %182 = vst.msk [vmem:[#allocation2] sm:$0xff] %vm48_vm1, %v180_v24  ;;  %v177_v26 = vadd.f32 %v204_v20, %v176_v25 }
 0x19a   :  { %v237_v27 = vpop.f32.mrf.mxu1 }
 0x19b   :  { %v181_v28 = vmax.f32 %v177_v26, 0.0 }
 0x19d   :  { %183 = vst.msk [vmem:[#allocation2 + $0x8] sm:$0xff] %vm48_vm1, %v181_v28 }
 0x19e   :  { %260 = shalt.err (!%p257_p4)
}
 0x19f   :  { %s274_s4 = smov 128   ;;  %s275_s12 = smov 8  }
 0x1a0   :  { %195 = dma.vmem_to_hbm [thread:$0]  %s190_s3, 256, %s347_s5, [#allocation3], %s274_s4, %s274_s4, %s275_s12  }
 0x1a1   :  { %269 = dma.done.wait [#allocation3], 256  }
 0x1a2   :  { %270 = vsyncadd [#allocation3], 4294967040 }
 0x1a3   :  { %199 = vsyncpa [#allocation3], 1 }

// kernel: tpu_custom_call.1
= control target key start
LH: loop header
LB: loop body
LE: loop exit
PB: predicated region body
PF: predicated region fallthrough
CT: control target
= control target key end

     0   :  { %v271_v1 = vmov 0.0   ;;  %vm272_vm0 = vmmov 0   ;;  %vm48_vm1 = vcmask 261120   ;;  %s342_s0 = inlined_call_operand.vmem [shape: f32[16,32], index: 0, kind: input, shape index: {}]   ;;  %s343_s1 = inlined_call_operand.vmem [shape: bf16[32,64], index: 1, kind: input, shape index: {}]   ;;  %s344_s2 = inlined_call_operand.vmem [shape: f32[1,64], index: 2, kind: input, shape index: {}]   ;;  %s345_s3 = inlined_call_operand.vmem [shape: bf16[64,32], index: 3, kind: input, shape index: {}]   ;;  %s346_s4 = inlined_call_operand.vmem [shape: f32[1,32], index: 4, kind: input, shape index: {}]   ;;  %s347_s5 = inlined_call_operand.hbm [shape: f32[16,32], index: 5, kind: output, shape index: {}]  }
   0x1   :  { %v243_v0 = vld [vmem:[%s343_s1 + $0x8] sm:$0xff]   ;;  %218 = vmatprep.subr.bf16.mxu0 %v271_v1  ;;  %v244_v2 = vld [vmem:[%s343_s1] sm:$0xff]   ;;  %226 = vmatprep.subr.bf16.mxu1 %v271_v1  ;;  %v245_v5 = vld [vmem:[%s345_s3 + $0x18] sm:$0xff]  }
   0x2   :  { %219 = vmatpush3.bf16.msra.mxu0 %v243_v0  ;;  %222 = vmatprep.mubr.msk.bf16.mxu0 %vm272_vm0, %v271_v1  ;;  %v22_v3 = vld [vmem:[%s342_s0] sm:$0xff]  ;;  %v23_v4 = vld [vmem:[%s342_s0 + $0x8] sm:$0xff] }
   0x3   :  { %220 = vmatprep.subr.bf16.mxu0 %v271_v1  ;;  %234 = vmatprep.mubr.msk.bf16.mxu1 %vm272_vm0, %v271_v1  ;;  %v24_v6 = vpack.c.bf16 %v23_v4, %v22_v3 }
   0x4   :  { %227 = vmatpush3.bf16.msra.mxu1 %v245_v5 }
   0x5   :  { %228 = vmatprep.subr.bf16.mxu1 %v271_v1 }
   0x6   :  { %221 = vmatpush3.bf16.msra.mxu0 %v244_v2 }
   0x7   :  { %10 = vsyncpa [#allocation3], 0  ;;  %v246_v7 = vld [vmem:[%s345_s3 + $0x10] sm:$0xff]   ;;  %v247_v8 = vld [vmem:[%s345_s3 + $0x8] sm:$0xff]   ;;  %vm135_vm2 = vcmask 523264  }
   0x8   :  { %229 = vmatpush3.bf16.msra.mxu1 %v246_v7  ;;  %v248_v9 = vld [vmem:[%s345_s3] sm:$0xff]  }
   0x9   :  { %223 = vmatmul.mubr.msk.bf16.vlgmr.msra.gmra.mxu0 %vm48_vm1, %v24_v6  ;;  %230 = vmatprep.subr.bf16.mxu1 %v271_v1  ;;  %v200_v10 = vld [vmem:[%s344_s2] ss:$0 sm:$0xff]  ;;  %s273_s2 = smov [#allocation2]  }
   0xa   :  { %v204_v20 = vld [vmem:[%s346_s4] ss:$0 sm:$0xff]  ;;  %s189_s3 = sshll.u32 %s273_s2, 4  ;;  %s190_s3 = int_to_ptr.vmem [resolvable:$true] %s189_s3 }
   0xb   :  { %s249_s11 = scalar_lea.vmem %s190_s3, 256  ;;  %p254_p1 = scmp.lt.s32.totalorder %s190_s3, %s190_s3 }
   0xc   :  { %231 = vmatpush3.bf16.msra.mxu1 %v247_v8  ;;  %p250_p0 = scmp.ne.s32.totalorder %s190_s3, %s249_s11  ;;  %p255_p2 = scmp.lt.s32.totalorder %s249_s11, %s249_s11 }
   0xd   :  { %232 = vmatprep.subr.bf16.mxu1 %v271_v1 }
   0xe   :  { %p256_p3 = por %p255_p2, %p254_p1 }
  0x10   :  { %233 = vmatpush3.bf16.msra.mxu1 %v248_v9  ;;  %p257_p4 = pnand %p256_p3, %p250_p0 }
  0xc9   :  { %v86_v11 = vpop.f32.mrf.mxu0 }
  0xca   :  { %v87_v13 = vadd.f32 %v200_v10, %v86_v11 }
  0xcb   :  { %v224_v12 = vpop.f32.mrf.mxu0 }
  0xcc   :  { %v93_v17 = vmax.f32 %v87_v13, 0.0 }
  0xcd   :  { %v89_v14 = vpop.f32.mrf.mxu0 }
  0xce   :  { %v90_v15 = vadd.f32 %v200_v10, %v89_v14 }
  0xcf   :  { %v225_v16 = vpop.f32.mrf.mxu0 }
  0xd0   :  { %v94_v18 = vmax.f32 %v90_v15, 0.0 }
  0xd2   :  { %v95_v19 = vpack.c.bf16 %v94_v18, %v93_v17 }
  0xd4   :  { %235 = vmatmul.mubr.msk.bf16.vlgmr.msra.gmra.mxu1 %vm135_vm2, %v95_v19 }
 0x194   :  { %v173_v21 = vpop.f32.mrf.mxu1 }
 0x195   :  { %v174_v22 = vadd.f32 %v204_v20, %v173_v21 }
 0x196   :  { %v236_v23 = vpop.f32.mrf.mxu1 }
 0x197   :  { %v180_v24 = vmax.f32 %v174_v22, 0.0 }
 0x198   :  { %v176_v25 = vpop.f32.mrf.mxu1 }
 0x199   :  { %182 = vst.msk [vmem:[#allocation2] sm:$0xff] %vm48_vm1, %v180_v24  ;;  %v177_v26 = vadd.f32 %v204_v20, %v176_v25 }
 0x19a   :  { %v237_v27 = vpop.f32.mrf.mxu1 }
 0x19b   :  { %v181_v28 = vmax.f32 %v177_v26, 0.0 }
 0x19d   :  { %183 = vst.msk [vmem:[#allocation2 + $0x8] sm:$0xff] %vm48_vm1, %v181_v28 }
 0x19e   :  { %260 = shalt.err (!%p257_p4)
}
 0x19f   :  { %s274_s4 = smov 128   ;;  %s275_s12 = smov 8  }
 0x1a0   :  { %195 = dma.vmem_to_hbm [thread:$0]  %s190_s3, 256, %s347_s5, [#allocation3], %s274_s4, %s274_s4, %s275_s12  }
 0x1a1   :  { %269 = dma.done.wait [#allocation3], 256  }
 0x1a2   :  { %270 = vsyncadd [#allocation3], 4294967040 }
 0x1a3   :  { %199 = vsyncpa [#allocation3], 1 }

</bundles_post_ra>
